<compile_context>
chip_gen: v5e
topology: v5e:2x2
jax: 0.10.0
libtpu: 0.0.40
codegen_flags: <defaults>
</compile_context>

<pallas_src>
import math

import jax
import jax.numpy as jnp
from jax import lax
from jax.experimental import pallas as pl
from jax.experimental.pallas import tpu as pltpu


def _fused_head_kernel(src_ref, dst_ref, v1_ref, v2_ref, c_ref, out_ref):
    """out[r, k] = tanh(src[r*g+k, :] @ v1 + dst[r*g+k, :] @ v2 + c).

    src_ref/dst_ref : (tile_rows, g*F)  lane-packed edge features
    v1_ref/v2_ref   : (g*F, g) f32      block-diagonal expansion of v1/v2
    c_ref           : (1, 1)  f32 SMEM  folded scalar bias
    out_ref         : (tile_rows, g) f32
    """
    # Upcast is a no-op for f32 inputs; for bf16 it keeps the matmul f32 x f32
    # (v1/v2 stay f32 per the review) and the VPU cast hides under the tile DMA.
    a = src_ref[...].astype(jnp.float32)
    b = dst_ref[...].astype(jnp.float32)
    # (tile_rows, g*F) @ (g*F, g): the block-diagonal V routes each of the g
    # packed sub-rows to its own output column.  MXU is otherwise idle here.
    s = jnp.dot(a, v1_ref[...], preferred_element_type=jnp.float32)
    s = s + jnp.dot(b, v2_ref[...], preferred_element_type=jnp.float32)
    out_ref[...] = jnp.tanh(s + c_ref[0, 0])


def relation_aware(src, dst, wd, bd, wf, bf, *, target_tile_bytes=2 * 1024 * 1024):
    """Eval-mode RelationAware head.

    src, dst : (N, in_feats)   edge endpoint features (float32 or bfloat16)
    wd       : (in_feats, h)   d_liner weight, pre-transposed to (in, out)
    bd       : (h,)            d_liner bias
    wf       : (1, 3*h)        f_liner weight (concat order [src_h | dst_h | diff])
    bf       : (1,)            f_liner bias
    returns  : (N,) float32 scores == tanh(f_liner(cat(src_h, dst_h, diff)))
    """
    N, in_feats = src.shape
    h = wd.shape[1]
    itemsize = jnp.dtype(src.dtype).itemsize

    # ---- eval-mode algebraic fold (exact; dropout == identity, no activation
    #      between d_liner and f_liner):
    #   score = src @ [Wd (wf_s + wf_x)] + dst @ [Wd (wf_d - wf_x)]
    #           + bd.(wf_s + wf_d) + bf
    wf3 = wf.reshape(3, h).astype(jnp.float32)
    wd32 = wd.astype(jnp.float32)
    bd32 = bd.astype(jnp.float32)
    hi = lax.Precision.HIGHEST                      # tiny weight-side dots, exact
    v1 = jnp.dot(wd32, wf3[0] + wf3[2], precision=hi)          # (in_feats,)
    v2 = jnp.dot(wd32, wf3[1] - wf3[2], precision=hi)          # (in_feats,)
    c = jnp.dot(bd32, wf3[0] + wf3[1], precision=hi) + bf.astype(jnp.float32)[0]
    c = jnp.reshape(c, (1, 1)).astype(jnp.float32)              # SMEM scalar

    # ---- lane packing: view (N, F) as (N//g, g*F) so the contracted axis is
    #      128 lanes wide.  Free reshape of a contiguous array (no HBM copy).
    g = 128 // in_feats if (in_feats <= 128 and 128 % in_feats == 0) else 1
    if g > 1:
        g = max(1, math.gcd(g, N))   # keep the reshape free; fall back if N % g
    packed_w = g * in_feats
    rp = N // g                      # packed rows (N % g == 0 by construction)
    src_p = src.reshape(rp, packed_w)
    dst_p = dst.reshape(rp, packed_w)

    # Block-diagonal expansion of v1/v2 (kept f32; ~4 KiB each, loaded once).
    eye = jnp.eye(g, dtype=jnp.float32)
    v1k = (eye[:, None, :] * v1.astype(jnp.float32)[None, :, None]).reshape(packed_w, g)
    v2k = (eye[:, None, :] * v2.astype(jnp.float32)[None, :, None]).reshape(packed_w, g)

    # ---- tiling: budget ~target_tile_bytes of (lane-padded, f32-equivalent)
    #      VMEM per input tile -> 1-4 MiB of HBM per grid step on all dtypes,
    #      and double-buffered usage stays far inside v5e's 16 MiB default and
    #      v7x's 32 MiB scoped / 64 MiB physical VMEM.
    padded_w = ((packed_w + 127) // 128) * 128      # VMEM lane padding (g==1 fallback)
    tile_rows = max(8, target_tile_bytes // (padded_w * 4))
    tile_rows = (tile_rows // 8) * 8
    if 2 * tile_rows > rp:
        if rp >= 16:
            # Small input: split into 2 blocks anyway so ("parallel",) can shard
            # across v7x's two TensorCores instead of collapsing to grid=1.
            tile_rows = ((rp + 15) // 16) * 8
        else:
            tile_rows = max(rp, 1)   # single full-extent block
    grid_n = pl.cdiv(rp, tile_rows)  # ragged last block: OOB input rows read
                                     # garbage, their scores land in padded
                                     # output rows and are sliced off below.

    out = pl.pallas_call(
        _fused_head_kernel,
        out_shape=jax.ShapeDtypeStruct((grid_n * tile_rows, g), jnp.float32),
        grid_spec=pltpu.PrefetchScalarGridSpec(
            num_scalar_prefetch=0,
            grid=(grid_n,),
            in_specs=[
                pl.BlockSpec((tile_rows, packed_w), lambda i: (i, 0)),   # src tile
                pl.BlockSpec((tile_rows, packed_w), lambda i: (i, 0)),   # dst tile
                pl.BlockSpec((packed_w, g), lambda i: (0, 0)),           # V1 (const)
                pl.BlockSpec((packed_w, g), lambda i: (0, 0)),           # V2 (const)
                pl.BlockSpec(memory_space=pltpu.MemorySpace.SMEM),       # c scalar
            ],
            out_specs=pl.BlockSpec((tile_rows, g), lambda i: (i, 0)),
        ),
        compiler_params=pltpu.CompilerParams(
            dimension_semantics=("parallel",),
            vmem_limit_bytes=32 * 1024 * 1024,   # explicit; actual use < 9 MiB
        ),
        cost_estimate=pl.CostEstimate(
            flops=4 * N * in_feats * g,          # two block-diag matmuls
            transcendentals=N,                   # tanh per edge
            bytes_accessed=2 * N * in_feats * itemsize + 4 * N,
        ),
    )(src_p, dst_p, v1k, v2k, c)

    # (grid_n*tile_rows, g) is row-major in original edge order -> free reshape.
    return out.reshape(-1)[:N]


def relation_aware_ref(src, dst, wd, bd, wf, bf):
    """Pure-JAX reference with the original (unfused) structure."""
    src_h = src @ wd + bd
    dst_h = dst @ wd + bd
    diff = src_h - dst_h
    e = jnp.concatenate([src_h, dst_h, diff], axis=1)
    score = (e @ wf.T + bf)[:, 0]
    return jnp.tanh(score)


if __name__ == "__main__":
    # Small but non-trivial: N deliberately NOT a multiple of the tile size
    # (exercises the ragged tail) and large enough that the wrapper splits the
    # work into >= 2 grid steps (exercises megacore sharding on v7x).
    N = 4000
    in_feats = 16
    h_feats = 32

    key = jax.random.PRNGKey(0)
    k_src, k_dst, k_wd, k_bd, k_wf, k_bf = jax.random.split(key, 6)

    src = jax.random.normal(k_src, (N, in_feats), dtype=jnp.float32)
    dst = jax.random.normal(k_dst, (N, in_feats), dtype=jnp.float32)

    # d_liner: Linear(in_feats, h_feats) -> weight stored transposed (in, h)
    wd = jax.random.normal(k_wd, (in_feats, h_feats), dtype=jnp.float32) * 0.1
    bd = jax.random.normal(k_bd, (h_feats,), dtype=jnp.float32) * 0.1
    # f_liner: Linear(3*h_feats, 1) -> weight (1, 3h), bias (1,)
    wf = jax.random.normal(k_wf, (1, 3 * h_feats), dtype=jnp.float32) * 0.1
    bf = jax.random.normal(k_bf, (1,), dtype=jnp.float32) * 0.1

    ref = relation_aware_ref(src, dst, wd, bd, wf, bf)

    # f32 edge features (default tile budget -> 2 grid steps at this N).
    out = jax.block_until_ready(relation_aware(src, dst, wd, bd, wf, bf))
    assert out.shape == (N,)
    assert jnp.allclose(out, ref, atol=1e-4, rtol=1e-4), "f32 mismatch vs reference"

    # Force a smaller per-step budget to exercise the multi-tile + ragged path.
    out_small = jax.block_until_ready(
        relation_aware(src, dst, wd, bd, wf, bf, target_tile_bytes=64 * 1024))
    assert jnp.allclose(out_small, ref, atol=1e-4, rtol=1e-4), "tiled mismatch vs reference"

    # bf16 edge features (halves HBM traffic).  v1/v2/c stay f32, so only the
    # bf16 quantization of src/dst remains -> tighter tolerance than rev 2.
    out_bf16 = jax.block_until_ready(
        relation_aware(src.astype(jnp.bfloat16), dst.astype(jnp.bfloat16),
                       wd, bd, wf, bf))
    assert out_bf16.shape == (N,)
    assert jnp.allclose(out_bf16, ref, atol=1e-2, rtol=1e-2), "bf16 mismatch vs reference"

    print("KERNEL_OK")
</pallas_src>

<mosaic_0001>
module attributes {stable_mosaic.version = 11 : i64} {
  func.func @_fused_head_kernel(%arg0: i32, %arg1: memref<256x128xf32, #tpu.memory_space<vmem>>, %arg2: memref<256x128xf32, #tpu.memory_space<vmem>>, %arg3: memref<128x8xf32, #tpu.memory_space<vmem>>, %arg4: memref<128x8xf32, #tpu.memory_space<vmem>>, %arg5: memref<1x1xf32, #tpu.memory_space<smem>>, %arg6: memref<256x8xf32, #tpu.memory_space<vmem>>) attributes {dimension_semantics = [#tpu.dimension_semantics<parallel>], iteration_bounds = array<i64: 2>, scalar_prefetch = 0 : i64, scratch_operands = 0 : i64, tpu.core_type = #tpu.core_type<tc>, window_params = [{transform_indices = @transform_0, window_bounds = array<i64: 256, 128>}, {transform_indices = @transform_1, window_bounds = array<i64: 256, 128>}, {pipeline_mode = #tpu.pipeline_mode<synchronous>, transform_indices = @transform_2, window_bounds = array<i64: 128, 8>}, {pipeline_mode = #tpu.pipeline_mode<synchronous>, transform_indices = @transform_3, window_bounds = array<i64: 128, 8>}, {transform_indices = @transform_4, window_bounds = array<i64: 1, 1>}, {transform_indices = @transform_5, window_bounds = array<i64: 256, 8>}]} {
    %c0 = arith.constant 0 : index
    %c0_0 = arith.constant 0 : index
    %0 = vector.load %arg1[%c0, %c0_0] : memref<256x128xf32, #tpu.memory_space<vmem>>, vector<256x128xf32>
    %c0_1 = arith.constant 0 : index
    %c0_2 = arith.constant 0 : index
    %1 = vector.load %arg2[%c0_1, %c0_2] : memref<256x128xf32, #tpu.memory_space<vmem>>, vector<256x128xf32>
    %c0_3 = arith.constant 0 : index
    %c0_4 = arith.constant 0 : index
    %2 = vector.load %arg3[%c0_3, %c0_4] : memref<128x8xf32, #tpu.memory_space<vmem>>, vector<128x8xf32>
    %cst = arith.constant dense<0.000000e+00> : vector<256x8xf32>
    %3 = tpu.matmul %0, %2, %cst {dimension_numbers = #tpu.dot_dimension_numbers<[1], [0], [0], [1], [0, 0, 1, 1], [], []>} : vector<256x128xf32>, vector<128x8xf32>, vector<256x8xf32> -> vector<256x8xf32>
    %c0_5 = arith.constant 0 : index
    %c0_6 = arith.constant 0 : index
    %4 = vector.load %arg4[%c0_5, %c0_6] : memref<128x8xf32, #tpu.memory_space<vmem>>, vector<128x8xf32>
    %cst_7 = arith.constant dense<0.000000e+00> : vector<256x8xf32>
    %5 = tpu.matmul %1, %4, %cst_7 {dimension_numbers = #tpu.dot_dimension_numbers<[1], [0], [0], [1], [0, 0, 1, 1], [], []>} : vector<256x128xf32>, vector<128x8xf32>, vector<256x8xf32> -> vector<256x8xf32>
    %6 = arith.addf %3, %5 : vector<256x8xf32>
    %c0_8 = arith.constant 0 : index
    %c0_9 = arith.constant 0 : index
    %7 = memref.load %arg5[%c0_8, %c0_9] : memref<1x1xf32, #tpu.memory_space<smem>>
    %8 = vector.broadcast %7 : f32 to vector<256x8xf32>
    %9 = arith.addf %6, %8 : vector<256x8xf32>
    %10 = math.tanh %9 : vector<256x8xf32>
    %c0_10 = arith.constant 0 : index
    %c0_11 = arith.constant 0 : index
    %11 = vector.load %arg6[%c0_10, %c0_11] : memref<256x8xf32, #tpu.memory_space<vmem>>, vector<256x8xf32>
    tpu.vector_store %arg6[%c0_10, %c0_11], %10 {strides = array<i32>} : memref<256x8xf32, #tpu.memory_space<vmem>>, vector<256x8xf32>,
    return
  }
  func.func @transform_0(%arg0: i32) -> (i32, i32) {
    %c0_i32 = arith.constant 0 : i32
    %c0_i32_0 = arith.constant 0 : i32
    return %arg0, %c0_i32 : i32, i32
  }
  func.func @transform_1(%arg0: i32) -> (i32, i32) {
    %c0_i32 = arith.constant 0 : i32
    %c0_i32_0 = arith.constant 0 : i32
    return %arg0, %c0_i32 : i32, i32
  }
  func.func @transform_2(%arg0: i32) -> (i32, i32) {
    %c0_i32 = arith.constant 0 : i32
    %c0_i32_0 = arith.constant 0 : i32
    %c0_i32_1 = arith.constant 0 : i32
    return %c0_i32, %c0_i32_0 : i32, i32
  }
  func.func @transform_3(%arg0: i32) -> (i32, i32) {
    %c0_i32 = arith.constant 0 : i32
    %c0_i32_0 = arith.constant 0 : i32
    %c0_i32_1 = arith.constant 0 : i32
    return %c0_i32, %c0_i32_0 : i32, i32
  }
  func.func @transform_4(%arg0: i32) -> (i32, i32) {
    %c0_i32 = arith.constant 0 : i32
    %c0_i32_0 = arith.constant 0 : i32
    %c0_i32_1 = arith.constant 0 : i32
    return %c0_i32, %c0_i32_0 : i32, i32
  }
  func.func @transform_5(%arg0: i32) -> (i32, i32) {
    %c0_i32 = arith.constant 0 : i32
    %c0_i32_0 = arith.constant 0 : i32
    return %arg0, %c0_i32 : i32, i32
  }
}

</mosaic_0001>

<bundles_post_ra>
// kernel: tpu_custom_call.1
= control target key start
LH: loop header
LB: loop body
LE: loop exit
PB: predicated region body
PF: predicated region fallthrough
CT: control target
= control target key end

     0   :  { %s1574_s0 = inlined_call_operand.hbm [shape: f32[500,128], index: 0, kind: input, shape index: {}]   ;;  %s1575_s1 = inlined_call_operand.hbm [shape: f32[500,128], index: 1, kind: input, shape index: {}]   ;;  %s1576_s2 = inlined_call_operand.vmem [shape: f32[128,8], index: 2, kind: input, shape index: {}]   ;;  %s1577_s3 = inlined_call_operand.vmem [shape: f32[128,8], index: 3, kind: input, shape index: {}]   ;;  %s1578_s4 = inlined_call_operand.<no memory space> [shape: f32[1,1], index: 4, kind: input, shape index: {}]   ;;  %s1579_s5 = inlined_call_operand.vmem [shape: f32[512,8], index: 5, kind: output, shape index: {}]  }
   0x1   :  { %10 = sst [smem:[#allocation2]] %s1578_s4 }
   0x2   :  { %11 = vsyncpa [#allocation4], 0 }
   0x3   :  { %13 = vsyncpa [#allocation4 + $0x1], 0 }
   0x4   :  { %14 = vsyncpa [#allocation6], 0 }
   0x5   :  { %16 = vsyncpa [#allocation6 + $0x1], 0  ;;  %s1144_s20 = smov 0   ;;  %s1146_s21 = smov 0  }
   0x6   :  { %s1148_s22 = smov 0   ;;  %s1150_s23 = smov 0  }
   0x7 LB: > { %s826_s4 = sadd.s32 4294967295, %s1103_s23   ;;  %s1164_s24 = sadd.s32 1, %s1103_s23   ;;  %s1103_s23 = sphi %s1150_s23, %s1587_s23   ;;  %s1099_s22 = sphi %s1148_s22, %s1586_s22   ;;  %s1095_s21 = sphi %s1146_s21, %s1585_s21   ;;  %s1091_s20 = sphi %s1144_s20, %s1584_s20  }
   0x8   : > { %s26_s25 = ssub.s32 %s1103_s23, %s1164_s24  ;;  %s29_s26 = sadd.s32 1, %s1099_s22 }
   0x9   : > { %p27_p0 = scmp.eq.s32.totalorder %s26_s25, 0  ;;  %p36_p1 = scmp.ne.s32.totalorder %s1099_s22, %s1095_s21 }
   0xa   : > { %p37_p2 = scmp.eq.s32.totalorder %s1103_s23, 0  ;;  %p42_p3 = scmp.ne.s32.totalorder %s1095_s21, %s1091_s20 }
   0xb   : > { %s1174_s27 = scalar_select %p27_p0, %s1099_s22, %s29_s26  }
   0xc   : > { %p1176_p4 = por %p37_p2, %p36_p1  ;;  %p43_p5 = scmp.eq.s32.totalorder %s826_s4, 0 }
   0xd   : > { %p829_p7 = scmp.ge.s32.totalorder %s1103_s23, 2 }
   0xe   : > { %p1182_p6 = por %p43_p5, %p42_p3 }
   0xf   : > { %186 = sbr.rel (%p829_p7) target bundleno = 92 (0x5c), region = 28 }
  0x14   : > { %189 = sbr.rel (!%p1176_p4) target bundleno = 56 (0x38), region = 32  ;;  %s190_s30 = sand.u32 (%p1176_p4), 1, %s1099_s22  }
  0x15   : > { %s831_s6 = sshll.u32 (%p1176_p4), %s1103_s23, 5  ;;  %s830_s7 = sshll.u32 (%p1176_p4), %s190_s30, 8 }
  0x16   : > { %s196_s8 = ssub.s32 (%p1176_p4), 63, %s831_s6  ;;  %s1194_s12 = scalar_lea.sflag (%p1176_p4), [#allocation4], %s190_s30 }
  0x17   : > { %p197_p8 = scmp.lt.s32.totalorder (%p1176_p4), %s196_s8, 32  ;;  %s194_s13 = scalar_lea.vmem (%p1176_p4), [#allocation3], %s830_s7 }
  0x19   : > { %s1589_s8 = smov (!%p197_p8, %s196_s8), 32 }
  0x1a   : > { %s832_s9 = sshll.u32 %s1589_s8, 3 }
  0x1b   : > { %s200_s10 = ssub.s32 256, %s832_s9 }
  0x1c   : > { %s201_s11 = sshll.u32 %s200_s10, 4 }
  0x1d   : > { %202 = vsyncadd %s1194_s12, %s201_s11  ;;  %p1197_p9 = scmp.ne.s32.totalorder %s832_s9, 0  ;;  %s851_s15 = sshll.u32 %s1103_s23, 8 }
  0x1e   : > { %s205_s18 = scalar_lea.hbm %s1574_s0, %s851_s15  ;;  %s1205_s19 = sshll.u32 %s194_s13, 4  ;;  %s210_s19 = int_to_ptr.vmem [resolvable:$true] %s1205_s19 }
  0x1f   : > { %s207_s20 = sshll.u32 %s205_s18, 4  ;;  %s836_s25 = sshll.u32 %s1589_s8, 7  ;;  %s1208_s20 = int_to_ptr.hbm [resolvable:$true] %s207_s20 }
  0x20   : > { %s987_s26 = sshra.s32 %s1208_s20, 4  ;;  %s989_s30 = sshrl.u32 %s836_s25, 4  ;;  %s988_s26 = int_to_ptr.hbm [resolvable:$true] %s987_s26 }
  0x21   : > { %s994_s6 = scalar_lea.hbm %s988_s26, %s989_s30  ;;  %s998_s10 = scalar_lea.hbm %s1574_s0, 504 }
  0x22   : > { %p995_p10 = scmp.ne.s32.totalorder %s988_s26, %s994_s6  ;;  %p999_p13 = scmp.lt.s32.totalorder %s988_s26, %s1574_s0 }
  0x23   : > { %p1000_p0 = scmp.lt.s32.totalorder %s998_s10, %s994_s6 }
  0x24   : > { %p996_p11 = pnand %p995_p10, %p1197_p9 }
  0x25   : > { %p1001_p1 = por %p1000_p0, %p999_p13 }
  0x26   : > { %p997_p12 = pneg %p996_p11 }
  0x28   : > { %p1002_p2 = pnand %p1001_p1, %p997_p12 }
  0x2a   : > { %1005 = shalt.err (!%p1002_p2)
}
  0x2b   : > { %s1006_s15 = sshra.s32 %s210_s19, 4  ;;  %s1105_s17 = smov [#allocation3]   ;;  %s1007_s15 = int_to_ptr.vmem [resolvable:$true] %s1006_s15 }
  0x2c   : > { %s1013_s16 = scalar_lea.vmem %s1007_s15, %s989_s30  ;;  %s1017_s18 = scalar_lea.vmem %s1105_s17, 512 }
  0x2d   : > { %p1014_p3 = scmp.ne.s32.totalorder %s1007_s15, %s1013_s16  ;;  %p1019_p8 = scmp.lt.s32.totalorder %s1017_s18, %s1013_s16 }
  0x2f   : > { %p1015_p5 = pnand %p1014_p3, %p1197_p9 }
  0x31   : > { %p1016_p7 = pneg %p1015_p5 }
  0x33   : > { %p1021_p10 = pnand %p1019_p8, %p1016_p7 }
  0x35   : > { %1024 = shalt.err (!%p1021_p10)
}
  0x36   : > { %s1106_s26 = smov 128   ;;  %s1107_s6 = smov 8  }
  0x37   : > { %215 = dma.hbm_to_vmem [thread:$0]  (%p1197_p9), %s1208_s20, %s836_s25, %s210_s19, %s1194_s12, %s1106_s26, %s1106_s26, %s1107_s6  }
  0x38 PF: > { %218 = sbr.rel (!%p1176_p4) target bundleno = 92 (0x5c), region = 36  ;;  %s219_s30 = sand.u32 (%p1176_p4), 1, %s1099_s22  }
  0x39   : > { %s838_s7 = sshll.u32 (%p1176_p4), %s1103_s23, 5  ;;  %s837_s9 = sshll.u32 (%p1176_p4), %s219_s30, 8 }
  0x3a   : > { %s225_s10 = ssub.s32 (%p1176_p4), 63, %s838_s7  ;;  %s1241_s15 = scalar_lea.sflag (%p1176_p4), [#allocation6], %s219_s30 }
  0x3b   : > { %p226_p11 = scmp.lt.s32.totalorder (%p1176_p4), %s225_s10, 32  ;;  %s223_s8 = scalar_lea.vmem (%p1176_p4), [#allocation5], %s837_s9 }
  0x3d   : > { %s1591_s10 = smov (!%p226_p11, %s225_s10), 32 }
  0x3e   : > { %s839_s11 = sshll.u32 %s1591_s10, 3 }
  0x3f   : > { %s229_s13 = ssub.s32 256, %s839_s11 }
  0x40   : > { %s230_s14 = sshll.u32 %s229_s13, 4 }
  0x41   : > { %231 = vsyncadd %s1241_s15, %s230_s14  ;;  %p1244_p4 = scmp.ne.s32.totalorder %s839_s11, 0  ;;  %s852_s12 = sshll.u32 %s1103_s23, 8 }
  0x42   : > { %s234_s25 = scalar_lea.hbm %s1575_s1, %s852_s12  ;;  %s1252_s16 = sshll.u32 %s223_s8, 4  ;;  %s239_s16 = int_to_ptr.vmem [resolvable:$true] %s1252_s16 }
  0x43   : > { %s236_s17 = sshll.u32 %s234_s25, 4  ;;  %s843_s18 = sshll.u32 %s1591_s10, 7  ;;  %s1255_s17 = int_to_ptr.hbm [resolvable:$true] %s236_s17 }
  0x44   : > { %s1026_s26 = sshra.s32 %s1255_s17, 4  ;;  %s1028_s6 = sshrl.u32 %s843_s18, 4  ;;  %s1027_s26 = int_to_ptr.hbm [resolvable:$true] %s1026_s26 }
  0x45   : > { %s1033_s30 = scalar_lea.hbm %s1027_s26, %s1028_s6  ;;  %s1037_s11 = scalar_lea.hbm %s1575_s1, 504 }
  0x46   : > { %p1034_p9 = scmp.ne.s32.totalorder %s1027_s26, %s1033_s30  ;;  %p1038_p0 = scmp.lt.s32.totalorder %s1027_s26, %s1575_s1 }
  0x47   : > { %p1039_p1 = scmp.lt.s32.totalorder %s1037_s11, %s1033_s30 }
  0x48   : > { %p1035_p12 = pnand %p1034_p9, %p1244_p4 }
  0x49   : > { %p1040_p2 = por %p1039_p1, %p1038_p0 }
  0x4a   : > { %p1036_p13 = pneg %p1035_p12 }
  0x4c   : > { %p1041_p3 = pnand %p1040_p2, %p1036_p13 }
  0x4e   : > { %1044 = shalt.err (!%p1041_p3)
}
  0x4f   : > { %s1045_s8 = sshra.s32 %s239_s16, 4  ;;  %s1108_s19 = smov [#allocation5]   ;;  %s1046_s8 = int_to_ptr.vmem [resolvable:$true] %s1045_s8 }
  0x50   : > { %s1052_s12 = scalar_lea.vmem %s1046_s8, %s1028_s6  ;;  %s1056_s20 = scalar_lea.vmem %s1108_s19, 512 }
  0x51   : > { %p1053_p5 = scmp.ne.s32.totalorder %s1046_s8, %s1052_s12  ;;  %p1058_p10 = scmp.lt.s32.totalorder %s1056_s20, %s1052_s12 }
  0x53   : > { %p1054_p7 = pnand %p1053_p5, %p1244_p4 }
  0x55   : > { %p1055_p8 = pneg %p1054_p7 }
  0x57   : > { %p1060_p11 = pnand %p1058_p10, %p1055_p8 }
  0x59   : > { %1063 = shalt.err (!%p1060_p11)
}
  0x5a   : > { %s1109_s25 = smov 128   ;;  %s1110_s26 = smov 8  }
  0x5b   : > { %244 = dma.hbm_to_vmem [thread:$0]  (%p1244_p4), %s1255_s17, %s843_s18, %s239_s16, %s1241_s15, %s1109_s25, %s1109_s25, %s1110_s26  }
  0x5c PF: > { %p844_p9 = scmp.ge.s32.totalorder %s1103_s23, 1  ;;  %p246_p12 = scmp.lt.s32.totalorder %s1103_s23, 3 }
  0x5e   : > { %p247_p13 = pnand %p844_p9, %p246_p12 }
  0x5f   : > { %s252_s6 = sand.u32 (!%p247_p13), 1, %s1095_s21  }
  0x60   : > { %250 = sbr.rel (%p247_p13) target bundleno = 401 (0x191), region = 40  ;;  %s845_s30 = sshll.u32 (!%p247_p13), %s252_s6, 8 }
  0x61   : > { %s253_s7 = scalar_lea.sflag (!%p247_p13), [#allocation4], %s252_s6  ;;  %s1284_s9 = scalar_lea.vmem (!%p247_p13), [#allocation3], %s845_s30 }
  0x65   : > { %1082 = dma.done.wait (%p1182_p6), %s253_s7, 4096  }
  0x66   : > { %1084 = vsyncadd (%p1182_p6), %s253_s7, 4294963200  ;;  %s263_s10 = scalar_lea.sflag [#allocation6], %s252_s6  ;;  %s1290_s15 = scalar_lea.vmem [#allocation5], %s845_s30 }
  0x67   : > { %1086 = dma.done.wait (%p1182_p6), %s263_s10, 4096  }
  0x68   : > { %1088 = vsyncadd (%p1182_p6), %s263_s10, 4294963200  ;;  %v410_v0 = vld [vmem:[%s1577_s3 + $0x78] sm:$0xff]  ;;  %v409_v2 = vld [vmem:[%s1577_s3 + $0x70] sm:$0xff]  ;;  %s637_s19 = sld [smem:[#allocation2]]  ;;  %s847_s20 = sshll.u32 %s826_s4, 5  ;;  %vm703_vm0 = vcmask 64512  }
  0x69   : > { %v394_v1 = vld [vmem:[%s1576_s2 + $0x78] sm:$0xff]  ;;  %853 = vmatpush.msra.mxu2 %v410_v0  ;;  %v393_v3 = vld [vmem:[%s1576_s2 + $0x70] sm:$0xff]  ;;  %v408_v4 = vld [vmem:[%s1577_s3 + $0x68] sm:$0xff]  ;;  %411 = vmatpush.msra.mxu0 %v410_v0  ;;  %p310_p6 = scmp.lt.s32.totalorder %s847_s20, 63 }
  0x6a   : > { %869 = vmatpush.msra.mxu3 %v394_v1  ;;  %v392_v5 = vld [vmem:[%s1576_s2 + $0x68] sm:$0xff]  ;;  %524 = vmatpush.msra.mxu1 %v394_v1  ;;  %v407_v6 = vld [vmem:[%s1577_s3 + $0x60] sm:$0xff]  ;;  %v406_v8 = vld [vmem:[%s1577_s3 + $0x58] sm:$0xff] }
  0x6b   : > { %854 = vmatpush.msra.mxu2 %v409_v2  ;;  %v391_v7 = vld [vmem:[%s1576_s2 + $0x60] sm:$0xff]  ;;  %412 = vmatpush.msra.mxu0 %v409_v2  ;;  %v390_v9 = vld [vmem:[%s1576_s2 + $0x58] sm:$0xff]  ;;  %v405_v10 = vld [vmem:[%s1577_s3 + $0x50] sm:$0xff]  ;;  %s1593_s20 = smov (!%p310_p6, %s847_s20), 63 }
  0x6c   : > { %870 = vmatpush.msra.mxu3 %v393_v3  ;;  %525 = vmatpush.msra.mxu1 %v393_v3  ;;  %v389_v11 = vld [vmem:[%s1576_s2 + $0x50] sm:$0xff]  ;;  %v404_v12 = vld [vmem:[%s1577_s3 + $0x48] sm:$0xff]  ;;  %v403_v14 = vld [vmem:[%s1577_s3 + $0x40] sm:$0xff] }
  0x6d   : > { %855 = vmatpush.msra.mxu2 %v408_v4  ;;  %413 = vmatpush.msra.mxu0 %v408_v4  ;;  %v388_v13 = vld [vmem:[%s1576_s2 + $0x48] sm:$0xff]  ;;  %v387_v15 = vld [vmem:[%s1576_s2 + $0x40] sm:$0xff]  ;;  %v402_v16 = vld [vmem:[%s1577_s3 + $0x38] sm:$0xff] }
  0x6e   : > { %871 = vmatpush.msra.mxu3 %v392_v5  ;;  %526 = vmatpush.msra.mxu1 %v392_v5  ;;  %v386_v17 = vld [vmem:[%s1576_s2 + $0x38] sm:$0xff]  ;;  %v401_v18 = vld [vmem:[%s1577_s3 + $0x30] sm:$0xff]  ;;  %v400_v20 = vld [vmem:[%s1577_s3 + $0x28] sm:$0xff] }
  0x6f   : > { %856 = vmatpush.msra.mxu2 %v407_v6  ;;  %414 = vmatpush.msra.mxu0 %v407_v6  ;;  %v385_v19 = vld [vmem:[%s1576_s2 + $0x30] sm:$0xff]  ;;  %v384_v21 = vld [vmem:[%s1576_s2 + $0x28] sm:$0xff]  ;;  %v399_v22 = vld [vmem:[%s1577_s3 + $0x20] sm:$0xff] }
  0x70   : > { %872 = vmatpush.msra.mxu3 %v391_v7  ;;  %527 = vmatpush.msra.mxu1 %v391_v7  ;;  %v383_v23 = vld [vmem:[%s1576_s2 + $0x20] sm:$0xff]  ;;  %v398_v24 = vld [vmem:[%s1577_s3 + $0x18] sm:$0xff]  ;;  %v397_v26 = vld [vmem:[%s1577_s3 + $0x10] sm:$0xff] }
  0x71   : > { %857 = vmatpush.msra.mxu2 %v406_v8  ;;  %415 = vmatpush.msra.mxu0 %v406_v8  ;;  %v382_v25 = vld [vmem:[%s1576_s2 + $0x18] sm:$0xff]  ;;  %v381_v27 = vld [vmem:[%s1576_s2 + $0x10] sm:$0xff]  ;;  %v396_v28 = vld [vmem:[%s1577_s3 + $0x8] sm:$0xff] }
  0x72   : > { %873 = vmatpush.msra.mxu3 %v390_v9  ;;  %528 = vmatpush.msra.mxu1 %v390_v9  ;;  %v380_v29 = vld [vmem:[%s1576_s2 + $0x8] sm:$0xff]  ;;  %v395_v30 = vld [vmem:[%s1577_s3] sm:$0xff]  ;;  %v365_v40 = vld [vmem:[%s1290_s15 + $0x90] sm:$0xff] }
  0x73   : > { %858 = vmatpush.msra.mxu2 %v405_v10  ;;  %416 = vmatpush.msra.mxu0 %v405_v10  ;;  %v379_v31 = vld [vmem:[%s1576_s2] sm:$0xff]  ;;  %v364_v36 = vld [vmem:[%s1290_s15 + $0x88] sm:$0xff]  ;;  %v333_v41 = vld [vmem:[%s1284_s9 + $0x90] sm:$0xff] }
  0x74   : > { %874 = vmatpush.msra.mxu3 %v389_v11  ;;  %529 = vmatpush.msra.mxu1 %v389_v11  ;;  %v363_v32 = vld [vmem:[%s1290_s15 + $0x80] sm:$0xff]  ;;  %v332_v37 = vld [vmem:[%s1284_s9 + $0x88] sm:$0xff]  ;;  %v349_v42 = vld [vmem:[%s1290_s15 + $0x10] sm:$0xff] }
  0x75   : > { %859 = vmatpush.msra.mxu2 %v404_v12  ;;  %417 = vmatpush.msra.mxu0 %v404_v12  ;;  %v331_v33 = vld [vmem:[%s1284_s9 + $0x80] sm:$0xff]  ;;  %v348_v38 = vld [vmem:[%s1290_s15 + $0x8] sm:$0xff]  ;;  %v317_v43 = vld [vmem:[%s1284_s9 + $0x10] sm:$0xff] }
  0x76   : > { %875 = vmatpush.msra.mxu3 %v388_v13  ;;  %530 = vmatpush.msra.mxu1 %v388_v13  ;;  %v347_v34 = vld [vmem:[%s1290_s15] sm:$0xff]  ;;  %v316_v39 = vld [vmem:[%s1284_s9 + $0x8] sm:$0xff]  ;;  %v366_v44 = vld [vmem:[%s1290_s15 + $0x98] sm:$0xff] }
  0x77   : > { %860 = vmatpush.msra.mxu2 %v403_v14  ;;  %418 = vmatpush.msra.mxu0 %v403_v14  ;;  %v315_v35 = vld [vmem:[%s1284_s9] sm:$0xff]  ;;  %v334_v45 = vld [vmem:[%s1284_s9 + $0x98] sm:$0xff]  ;;  %v368_v52 = vld [vmem:[%s1290_s15 + $0xa8] sm:$0xff] }
  0x78   : > { %876 = vmatpush.msra.mxu3 %v387_v15  ;;  %531 = vmatpush.msra.mxu1 %v387_v15  ;;  %v350_v46 = vld [vmem:[%s1290_s15 + $0x18] sm:$0xff]  ;;  %v367_v48 = vld [vmem:[%s1290_s15 + $0xa0] sm:$0xff]  ;;  %v336_v53 = vld [vmem:[%s1284_s9 + $0xa8] sm:$0xff] }
  0x79   : > { %861 = vmatpush.msra.mxu2 %v402_v16  ;;  %419 = vmatpush.msra.mxu0 %v402_v16  ;;  %v318_v47 = vld [vmem:[%s1284_s9 + $0x18] sm:$0xff]  ;;  %v335_v49 = vld [vmem:[%s1284_s9 + $0xa0] sm:$0xff]  ;;  %v352_v54 = vld [vmem:[%s1290_s15 + $0x28] sm:$0xff] }
  0x7a   : > { %877 = vmatpush.msra.mxu3 %v386_v17  ;;  %532 = vmatpush.msra.mxu1 %v386_v17  ;;  %v351_v50 = vld [vmem:[%s1290_s15 + $0x20] sm:$0xff]  ;;  %v320_v55 = vld [vmem:[%s1284_s9 + $0x28] sm:$0xff]  ;;  %v369_v56 = vld [vmem:[%s1290_s15 + $0xb0] sm:$0xff] }
  0x7b   : > { %862 = vmatpush.msra.mxu2 %v401_v18  ;;  %420 = vmatpush.msra.mxu0 %v401_v18  ;;  %v319_v51 = vld [vmem:[%s1284_s9 + $0x20] sm:$0xff]  ;;  %v337_v57 = vld [vmem:[%s1284_s9 + $0xb0] sm:$0xff]  ;;  %v370_v60 = vld [vmem:[%s1290_s15 + $0xb8] sm:$0xff] }
  0x7c   : > { %878 = vmatpush.msra.mxu3 %v385_v19  ;;  %533 = vmatpush.msra.mxu1 %v385_v19  ;;  %v353_v58 = vld [vmem:[%s1290_s15 + $0x30] sm:$0xff]  ;;  %v338_v61 = vld [vmem:[%s1284_s9 + $0xb8] sm:$0xff]  ;;  %v371_v0 = vld [vmem:[%s1290_s15 + $0xc0] sm:$0xff] }
  0x7d   : > { %863 = vmatpush.msra.mxu2 %v400_v20  ;;  %421 = vmatpush.msra.mxu0 %v400_v20  ;;  %v321_v59 = vld [vmem:[%s1284_s9 + $0x30] sm:$0xff]  ;;  %v354_v62 = vld [vmem:[%s1290_s15 + $0x38] sm:$0xff]  ;;  %v339_v1 = vld [vmem:[%s1284_s9 + $0xc0] sm:$0xff] }
  0x7e   : > { %879 = vmatpush.msra.mxu3 %v384_v21  ;;  %534 = vmatpush.msra.mxu1 %v384_v21  ;;  %v322_v63 = vld [vmem:[%s1284_s9 + $0x38] sm:$0xff]  ;;  %v355_v2 = vld [vmem:[%s1290_s15 + $0x40] sm:$0xff]  ;;  %v372_v4 = vld [vmem:[%s1290_s15 + $0xc8] sm:$0xff] }
  0x7f   : > { %864 = vmatpush.msra.mxu2 %v399_v22  ;;  %422 = vmatpush.msra.mxu0 %v399_v22  ;;  %v323_v3 = vld [vmem:[%s1284_s9 + $0x40] sm:$0xff]  ;;  %v340_v5 = vld [vmem:[%s1284_s9 + $0xc8] sm:$0xff]  ;;  %v373_v8 = vld [vmem:[%s1290_s15 + $0xd0] sm:$0xff] }
  0x80   : > { %880 = vmatpush.msra.mxu3 %v383_v23  ;;  %535 = vmatpush.msra.mxu1 %v383_v23  ;;  %v356_v6 = vld [vmem:[%s1290_s15 + $0x48] sm:$0xff]  ;;  %v341_v9 = vld [vmem:[%s1284_s9 + $0xd0] sm:$0xff]  ;;  %v374_v12 = vld [vmem:[%s1290_s15 + $0xd8] sm:$0xff] }
  0x81   : > { %865 = vmatpush.msra.mxu2 %v398_v24  ;;  %423 = vmatpush.msra.mxu0 %v398_v24  ;;  %v324_v7 = vld [vmem:[%s1284_s9 + $0x48] sm:$0xff]  ;;  %v357_v10 = vld [vmem:[%s1290_s15 + $0x50] sm:$0xff]  ;;  %v342_v13 = vld [vmem:[%s1284_s9 + $0xd8] sm:$0xff] }
  0x82   : > { %881 = vmatpush.msra.mxu3 %v382_v25  ;;  %536 = vmatpush.msra.mxu1 %v382_v25  ;;  %v325_v11 = vld [vmem:[%s1284_s9 + $0x50] sm:$0xff]  ;;  %v358_v14 = vld [vmem:[%s1290_s15 + $0x58] sm:$0xff]  ;;  %v375_v16 = vld [vmem:[%s1290_s15 + $0xe0] sm:$0xff] }
  0x83   : > { %866 = vmatpush.msra.mxu2 %v397_v26  ;;  %424 = vmatpush.msra.mxu0 %v397_v26  ;;  %v326_v15 = vld [vmem:[%s1284_s9 + $0x58] sm:$0xff]  ;;  %v343_v17 = vld [vmem:[%s1284_s9 + $0xe0] sm:$0xff]  ;;  %v376_v20 = vld [vmem:[%s1290_s15 + $0xe8] sm:$0xff] }
  0x84   : > { %882 = vmatpush.msra.mxu3 %v381_v27  ;;  %537 = vmatpush.msra.mxu1 %v381_v27  ;;  %v359_v18 = vld [vmem:[%s1290_s15 + $0x60] sm:$0xff]  ;;  %v344_v21 = vld [vmem:[%s1284_s9 + $0xe8] sm:$0xff]  ;;  %v377_v24 = vld [vmem:[%s1290_s15 + $0xf0] sm:$0xff] }
  0x85   : > { %867 = vmatpush.msra.mxu2 %v396_v28  ;;  %425 = vmatpush.msra.mxu0 %v396_v28  ;;  %v327_v19 = vld [vmem:[%s1284_s9 + $0x60] sm:$0xff]  ;;  %v360_v22 = vld [vmem:[%s1290_s15 + $0x68] sm:$0xff]  ;;  %v345_v25 = vld [vmem:[%s1284_s9 + $0xf0] sm:$0xff] }
  0x86   : > { %883 = vmatpush.msra.mxu3 %v380_v29  ;;  %538 = vmatpush.msra.mxu1 %v380_v29  ;;  %v328_v23 = vld [vmem:[%s1284_s9 + $0x68] sm:$0xff]  ;;  %v361_v26 = vld [vmem:[%s1290_s15 + $0x70] sm:$0xff]  ;;  %v378_v28 = vld [vmem:[%s1290_s15 + $0xf8] sm:$0xff] }
  0x87   : > { %868 = vmatpush.msra.mxu2 %v395_v30  ;;  %426 = vmatpush.msra.mxu0 %v395_v30  ;;  %v329_v27 = vld [vmem:[%s1284_s9 + $0x70] sm:$0xff]  ;;  %v346_v29 = vld [vmem:[%s1284_s9 + $0xf8] sm:$0xff] }
  0x88   : > { %884 = vmatpush.msra.mxu3 %v379_v31  ;;  %475 = vmatmul.f32.vlgmr.msra.gmra.mxu2 %v363_v32  ;;  %v362_v30 = vld [vmem:[%s1290_s15 + $0x78] sm:$0xff] }
  0x89   : > { %588 = vmatmul.f32.vlgmr.msra.gmra.mxu3 %v331_v33  ;;  %539 = vmatpush.msra.mxu1 %v379_v31  ;;  %v330_v31 = vld [vmem:[%s1284_s9 + $0x78] sm:$0xff]  ;;  %s848_s9 = sshll.u32 %s1593_s20, 3 }
  0x8a   : > { %427 = vmatmul.f32.vlgmr.msra.gmra.mxu0 %v347_v34  ;;  %540 = vmatmul.f32.vlgmr.msra.gmra.mxu1 %v315_v35  ;;  %v1458_v34 = vstv %s637_s19  ;;  %s1465_s15 = scalar_lea.vmem %s1579_s5, %s848_s9 }
  0x90   : > { %478 = vmatmul.f32.gmra.mxu2 %v364_v36 }
  0x91   : > { %591 = vmatmul.f32.gmra.mxu3 %v332_v37 }
  0x92   : > { %430 = vmatmul.f32.gmra.mxu0 %v348_v38  ;;  %543 = vmatmul.f32.gmra.mxu1 %v316_v39 }
  0x98   : > { %481 = vmatmul.f32.gmra.mxu2 %v365_v40 }
  0x99   : > { %594 = vmatmul.f32.gmra.mxu3 %v333_v41 }
  0x9a   : > { %433 = vmatmul.f32.gmra.mxu0 %v349_v42  ;;  %546 = vmatmul.f32.gmra.mxu1 %v317_v43 }
  0xa0   : > { %484 = vmatmul.f32.gmra.mxu2 %v366_v44 }
  0xa1   : > { %597 = vmatmul.f32.gmra.mxu3 %v334_v45 }
  0xa2   : > { %436 = vmatmul.f32.gmra.mxu0 %v350_v46  ;;  %549 = vmatmul.f32.gmra.mxu1 %v318_v47 }
  0xa8   : > { %487 = vmatmul.f32.gmra.mxu2 %v367_v48 }
  0xa9   : > { %600 = vmatmul.f32.gmra.mxu3 %v335_v49 }
  0xaa   : > { %439 = vmatmul.f32.gmra.mxu0 %v351_v50  ;;  %552 = vmatmul.f32.gmra.mxu1 %v319_v51 }
  0xb0   : > { %490 = vmatmul.f32.gmra.mxu2 %v368_v52 }
  0xb1   : > { %603 = vmatmul.f32.gmra.mxu3 %v336_v53 }
  0xb2   : > { %442 = vmatmul.f32.gmra.mxu0 %v352_v54  ;;  %555 = vmatmul.f32.gmra.mxu1 %v320_v55 }
  0xb8   : > { %493 = vmatmul.f32.gmra.mxu2 %v369_v56 }
  0xb9   : > { %606 = vmatmul.f32.gmra.mxu3 %v337_v57 }
  0xba   : > { %445 = vmatmul.f32.gmra.mxu0 %v353_v58  ;;  %558 = vmatmul.f32.gmra.mxu1 %v321_v59 }
  0xc0   : > { %496 = vmatmul.f32.gmra.mxu2 %v370_v60 }
  0xc1   : > { %609 = vmatmul.f32.gmra.mxu3 %v338_v61 }
  0xc2   : > { %448 = vmatmul.f32.gmra.mxu0 %v354_v62  ;;  %561 = vmatmul.f32.gmra.mxu1 %v322_v63 }
  0xc8   : > { %499 = vmatmul.f32.gmra.mxu2 %v371_v0 }
  0xc9   : > { %612 = vmatmul.f32.gmra.mxu3 %v339_v1 }
  0xca   : > { %451 = vmatmul.f32.gmra.mxu0 %v355_v2  ;;  %564 = vmatmul.f32.gmra.mxu1 %v323_v3 }
  0xd0   : > { %502 = vmatmul.f32.gmra.mxu2 %v372_v4 }
  0xd1   : > { %615 = vmatmul.f32.gmra.mxu3 %v340_v5 }
  0xd2   : > { %454 = vmatmul.f32.gmra.mxu0 %v356_v6  ;;  %567 = vmatmul.f32.gmra.mxu1 %v324_v7 }
  0xd8   : > { %505 = vmatmul.f32.gmra.mxu2 %v373_v8 }
  0xd9   : > { %618 = vmatmul.f32.gmra.mxu3 %v341_v9 }
  0xda   : > { %457 = vmatmul.f32.gmra.mxu0 %v357_v10  ;;  %570 = vmatmul.f32.gmra.mxu1 %v325_v11 }
  0xe0   : > { %508 = vmatmul.f32.gmra.mxu2 %v374_v12 }
  0xe1   : > { %621 = vmatmul.f32.gmra.mxu3 %v342_v13 }
  0xe2   : > { %460 = vmatmul.f32.gmra.mxu0 %v358_v14  ;;  %573 = vmatmul.f32.gmra.mxu1 %v326_v15 }
  0xe8   : > { %511 = vmatmul.f32.gmra.mxu2 %v375_v16 }
  0xe9   : > { %624 = vmatmul.f32.gmra.mxu3 %v343_v17 }
  0xea   : > { %463 = vmatmul.f32.gmra.mxu0 %v359_v18  ;;  %576 = vmatmul.f32.gmra.mxu1 %v327_v19 }
  0xf0   : > { %514 = vmatmul.f32.gmra.mxu2 %v376_v20 }
  0xf1   : > { %627 = vmatmul.f32.gmra.mxu3 %v344_v21 }
  0xf2   : > { %466 = vmatmul.f32.gmra.mxu0 %v360_v22  ;;  %579 = vmatmul.f32.gmra.mxu1 %v328_v23 }
  0xf8   : > { %517 = vmatmul.f32.gmra.mxu2 %v377_v24 }
  0xf9   : > { %630 = vmatmul.f32.gmra.mxu3 %v345_v25 }
  0xfa   : > { %469 = vmatmul.f32.gmra.mxu0 %v361_v26  ;;  %582 = vmatmul.f32.gmra.mxu1 %v329_v27 }
 0x100   : > { %520 = vmatmul.f32.gmra.mxu2 %v378_v28 }
 0x101   : > { %633 = vmatmul.f32.gmra.mxu3 %v346_v29 }
 0x102   : > { %472 = vmatmul.f32.gmra.mxu0 %v362_v30  ;;  %585 = vmatmul.f32.gmra.mxu1 %v330_v31 }
 0x107   : > { %v428_v32 = vpop.f32.mrf.mxu0  ;;  %v541_v33 = vpop.f32.mrf.mxu1 }
 0x108   : > { %v542_v35 = vadd.f32 %v541_v33, %v428_v32 }
 0x10a   : > { %v639_v36 = vadd.f32 %v1458_v34, %v542_v35 }
 0x10b   : > { %v476_v37 = vpop.f32.mrf.mxu2 }
 0x10c   : > { %v589_v38 = vpop.f32.mrf.mxu3  ;;  %923 = vtanh.f32 %v639_v36 }
 0x10d   : > { %v590_v39 = vadd.f32 %v589_v38, %v476_v37 }
 0x10f   : > { %v655_v40 = vadd.f32 %v1458_v34, %v590_v39  ;;  %v431_v41 = vpop.f32.mrf.mxu0  ;;  %v544_v42 = vpop.f32.mrf.mxu1 }
 0x110   : > { %v545_v43 = vadd.f32 %v544_v42, %v431_v41 }
 0x111   : > { %925 = vtanh.f32 %v655_v40 }
 0x112   : > { %v924_v44 = vpop.eup %923  ;;  %v640_v45 = vadd.f32 %v1458_v34, %v545_v43 }
 0x113   : > { %704 = vst.msk [vmem:[%s1465_s15] sm:$0xff] %vm703_vm0, %v924_v44  ;;  %v479_v46 = vpop.f32.mrf.mxu2 }
 0x114   : > { %v592_v47 = vpop.f32.mrf.mxu3  ;;  %927 = vtanh.f32 %v640_v45 }
 0x115   : > { %v593_v48 = vadd.f32 %v592_v47, %v479_v46 }
 0x117   : > { %v926_v49 = vpop.eup %925  ;;  %v656_v50 = vadd.f32 %v1458_v34, %v593_v48  ;;  %v434_v51 = vpop.f32.mrf.mxu0 }
 0x118   : > { %720 = vst.msk [vmem:[%s1465_s15 + $0x80] sm:$0xff] %vm703_vm0, %v926_v49  ;;  %v547_v52 = vpop.f32.mrf.mxu1 }
 0x119   : > { %929 = vtanh.f32 %v656_v50  ;;  %v548_v53 = vadd.f32 %v547_v52, %v434_v51 }
 0x11a   : > { %v928_v54 = vpop.eup %927 }
 0x11b   : > { %v641_v55 = vadd.f32 %v1458_v34, %v548_v53  ;;  %705 = vst.msk [vmem:[%s1465_s15 + $0x8] sm:$0xff] %vm703_vm0, %v928_v54  ;;  %v482_v56 = vpop.f32.mrf.mxu2 }
 0x11c   : > { %v595_v57 = vpop.f32.mrf.mxu3 }
 0x11d   : > { %931 = vtanh.f32 %v641_v55  ;;  %v596_v58 = vadd.f32 %v595_v57, %v482_v56 }
 0x11f   : > { %v930_v59 = vpop.eup %929  ;;  %v657_v60 = vadd.f32 %v1458_v34, %v596_v58  ;;  %v437_v61 = vpop.f32.mrf.mxu0 }
 0x120   : > { %721 = vst.msk [vmem:[%s1465_s15 + $0x88] sm:$0xff] %vm703_vm0, %v930_v59  ;;  %v550_v62 = vpop.f32.mrf.mxu1 }
 0x121   : > { %933 = vtanh.f32 %v657_v60  ;;  %v551_v63 = vadd.f32 %v550_v62, %v437_v61 }
 0x123   : > { %v932_v0 = vpop.eup %931  ;;  %v642_v1 = vadd.f32 %v1458_v34, %v551_v63  ;;  %v485_v2 = vpop.f32.mrf.mxu2 }
 0x124   : > { %706 = vst.msk [vmem:[%s1465_s15 + $0x10] sm:$0xff] %vm703_vm0, %v932_v0  ;;  %v598_v3 = vpop.f32.mrf.mxu3 }
 0x125   : > { %935 = vtanh.f32 %v642_v1  ;;  %v599_v4 = vadd.f32 %v598_v3, %v485_v2 }
 0x127   : > { %v934_v5 = vpop.eup %933  ;;  %v658_v6 = vadd.f32 %v1458_v34, %v599_v4  ;;  %v440_v7 = vpop.f32.mrf.mxu0 }
 0x128   : > { %722 = vst.msk [vmem:[%s1465_s15 + $0x90] sm:$0xff] %vm703_vm0, %v934_v5  ;;  %v553_v8 = vpop.f32.mrf.mxu1 }
 0x129   : > { %937 = vtanh.f32 %v658_v6  ;;  %v554_v9 = vadd.f32 %v553_v8, %v440_v7 }
 0x12b   : > { %v936_v10 = vpop.eup %935  ;;  %v643_v11 = vadd.f32 %v1458_v34, %v554_v9  ;;  %v488_v12 = vpop.f32.mrf.mxu2 }
 0x12c   : > { %707 = vst.msk [vmem:[%s1465_s15 + $0x18] sm:$0xff] %vm703_vm0, %v936_v10  ;;  %v601_v13 = vpop.f32.mrf.mxu3 }
 0x12d   : > { %939 = vtanh.f32 %v643_v11  ;;  %v602_v14 = vadd.f32 %v601_v13, %v488_v12 }
 0x12f   : > { %v938_v15 = vpop.eup %937  ;;  %v659_v16 = vadd.f32 %v1458_v34, %v602_v14  ;;  %v443_v17 = vpop.f32.mrf.mxu0 }
 0x130   : > { %723 = vst.msk [vmem:[%s1465_s15 + $0x98] sm:$0xff] %vm703_vm0, %v938_v15  ;;  %v556_v18 = vpop.f32.mrf.mxu1 }
 0x131   : > { %941 = vtanh.f32 %v659_v16  ;;  %v557_v19 = vadd.f32 %v556_v18, %v443_v17 }
 0x133   : > { %v940_v20 = vpop.eup %939  ;;  %v644_v21 = vadd.f32 %v1458_v34, %v557_v19  ;;  %v491_v22 = vpop.f32.mrf.mxu2 }
 0x134   : > { %708 = vst.msk [vmem:[%s1465_s15 + $0x20] sm:$0xff] %vm703_vm0, %v940_v20  ;;  %v604_v23 = vpop.f32.mrf.mxu3 }
 0x135   : > { %943 = vtanh.f32 %v644_v21  ;;  %v605_v24 = vadd.f32 %v604_v23, %v491_v22 }
 0x137   : > { %v942_v25 = vpop.eup %941  ;;  %v660_v26 = vadd.f32 %v1458_v34, %v605_v24  ;;  %v446_v27 = vpop.f32.mrf.mxu0 }
 0x138   : > { %724 = vst.msk [vmem:[%s1465_s15 + $0xa0] sm:$0xff] %vm703_vm0, %v942_v25  ;;  %v559_v28 = vpop.f32.mrf.mxu1 }
 0x139   : > { %945 = vtanh.f32 %v660_v26  ;;  %v560_v29 = vadd.f32 %v559_v28, %v446_v27 }
 0x13b   : > { %v944_v30 = vpop.eup %943  ;;  %v645_v31 = vadd.f32 %v1458_v34, %v560_v29  ;;  %v494_v32 = vpop.f32.mrf.mxu2 }
 0x13c   : > { %709 = vst.msk [vmem:[%s1465_s15 + $0x28] sm:$0xff] %vm703_vm0, %v944_v30  ;;  %v607_v33 = vpop.f32.mrf.mxu3 }
 0x13d   : > { %947 = vtanh.f32 %v645_v31  ;;  %v608_v35 = vadd.f32 %v607_v33, %v494_v32 }
 0x13f   : > { %v946_v36 = vpop.eup %945  ;;  %v661_v37 = vadd.f32 %v1458_v34, %v608_v35  ;;  %v449_v38 = vpop.f32.mrf.mxu0 }
 0x140   : > { %725 = vst.msk [vmem:[%s1465_s15 + $0xa8] sm:$0xff] %vm703_vm0, %v946_v36  ;;  %v562_v39 = vpop.f32.mrf.mxu1 }
 0x141   : > { %949 = vtanh.f32 %v661_v37  ;;  %v563_v40 = vadd.f32 %v562_v39, %v449_v38 }
 0x143   : > { %v948_v41 = vpop.eup %947  ;;  %v646_v42 = vadd.f32 %v1458_v34, %v563_v40  ;;  %v497_v43 = vpop.f32.mrf.mxu2 }
 0x144   : > { %710 = vst.msk [vmem:[%s1465_s15 + $0x30] sm:$0xff] %vm703_vm0, %v948_v41  ;;  %v610_v44 = vpop.f32.mrf.mxu3 }
 0x145   : > { %951 = vtanh.f32 %v646_v42  ;;  %v611_v45 = vadd.f32 %v610_v44, %v497_v43 }
 0x147   : > { %v950_v46 = vpop.eup %949  ;;  %v662_v47 = vadd.f32 %v1458_v34, %v611_v45  ;;  %v452_v48 = vpop.f32.mrf.mxu0 }
 0x148   : > { %726 = vst.msk [vmem:[%s1465_s15 + $0xb0] sm:$0xff] %vm703_vm0, %v950_v46  ;;  %v565_v49 = vpop.f32.mrf.mxu1 }
 0x149   : > { %953 = vtanh.f32 %v662_v47  ;;  %v566_v50 = vadd.f32 %v565_v49, %v452_v48 }
 0x14b   : > { %v952_v51 = vpop.eup %951  ;;  %v647_v52 = vadd.f32 %v1458_v34, %v566_v50  ;;  %v500_v53 = vpop.f32.mrf.mxu2 }
 0x14c   : > { %711 = vst.msk [vmem:[%s1465_s15 + $0x38] sm:$0xff] %vm703_vm0, %v952_v51  ;;  %v613_v54 = vpop.f32.mrf.mxu3 }
 0x14d   : > { %955 = vtanh.f32 %v647_v52  ;;  %v614_v55 = vadd.f32 %v613_v54, %v500_v53 }
 0x14f   : > { %v954_v56 = vpop.eup %953  ;;  %v663_v57 = vadd.f32 %v1458_v34, %v614_v55  ;;  %v455_v58 = vpop.f32.mrf.mxu0 }
 0x150   : > { %727 = vst.msk [vmem:[%s1465_s15 + $0xb8] sm:$0xff] %vm703_vm0, %v954_v56  ;;  %v568_v59 = vpop.f32.mrf.mxu1 }
 0x151   : > { %957 = vtanh.f32 %v663_v57  ;;  %v569_v60 = vadd.f32 %v568_v59, %v455_v58 }
 0x153   : > { %v956_v61 = vpop.eup %955  ;;  %v648_v62 = vadd.f32 %v1458_v34, %v569_v60  ;;  %v503_v63 = vpop.f32.mrf.mxu2 }
 0x154   : > { %712 = vst.msk [vmem:[%s1465_s15 + $0x40] sm:$0xff] %vm703_vm0, %v956_v61  ;;  %v616_v0 = vpop.f32.mrf.mxu3 }
 0x155   : > { %959 = vtanh.f32 %v648_v62  ;;  %v617_v1 = vadd.f32 %v616_v0, %v503_v63 }
 0x157   : > { %v958_v2 = vpop.eup %957  ;;  %v664_v3 = vadd.f32 %v1458_v34, %v617_v1  ;;  %v458_v4 = vpop.f32.mrf.mxu0 }
 0x158   : > { %728 = vst.msk [vmem:[%s1465_s15 + $0xc0] sm:$0xff] %vm703_vm0, %v958_v2  ;;  %v571_v5 = vpop.f32.mrf.mxu1 }
 0x159   : > { %961 = vtanh.f32 %v664_v3  ;;  %v572_v6 = vadd.f32 %v571_v5, %v458_v4 }
 0x15b   : > { %v960_v7 = vpop.eup %959  ;;  %v649_v8 = vadd.f32 %v1458_v34, %v572_v6  ;;  %v506_v9 = vpop.f32.mrf.mxu2 }
 0x15c   : > { %713 = vst.msk [vmem:[%s1465_s15 + $0x48] sm:$0xff] %vm703_vm0, %v960_v7  ;;  %v619_v10 = vpop.f32.mrf.mxu3 }
 0x15d   : > { %963 = vtanh.f32 %v649_v8  ;;  %v620_v11 = vadd.f32 %v619_v10, %v506_v9 }
 0x15f   : > { %v962_v12 = vpop.eup %961  ;;  %v665_v13 = vadd.f32 %v1458_v34, %v620_v11  ;;  %v461_v14 = vpop.f32.mrf.mxu0 }
 0x160   : > { %729 = vst.msk [vmem:[%s1465_s15 + $0xc8] sm:$0xff] %vm703_vm0, %v962_v12  ;;  %v574_v15 = vpop.f32.mrf.mxu1 }
 0x161   : > { %965 = vtanh.f32 %v665_v13  ;;  %v575_v16 = vadd.f32 %v574_v15, %v461_v14 }
 0x163   : > { %v964_v17 = vpop.eup %963  ;;  %v650_v18 = vadd.f32 %v1458_v34, %v575_v16  ;;  %v509_v19 = vpop.f32.mrf.mxu2 }
 0x164   : > { %714 = vst.msk [vmem:[%s1465_s15 + $0x50] sm:$0xff] %vm703_vm0, %v964_v17  ;;  %v622_v20 = vpop.f32.mrf.mxu3 }
 0x165   : > { %967 = vtanh.f32 %v650_v18  ;;  %v623_v21 = vadd.f32 %v622_v20, %v509_v19 }
 0x167   : > { %v966_v22 = vpop.eup %965  ;;  %v666_v23 = vadd.f32 %v1458_v34, %v623_v21  ;;  %v464_v24 = vpop.f32.mrf.mxu0 }
 0x168   : > { %730 = vst.msk [vmem:[%s1465_s15 + $0xd0] sm:$0xff] %vm703_vm0, %v966_v22  ;;  %v577_v25 = vpop.f32.mrf.mxu1 }
 0x169   : > { %969 = vtanh.f32 %v666_v23  ;;  %v578_v26 = vadd.f32 %v577_v25, %v464_v24 }
 0x16b   : > { %v968_v27 = vpop.eup %967  ;;  %v651_v28 = vadd.f32 %v1458_v34, %v578_v26  ;;  %v512_v29 = vpop.f32.mrf.mxu2 }
 0x16c   : > { %715 = vst.msk [vmem:[%s1465_s15 + $0x58] sm:$0xff] %vm703_vm0, %v968_v27  ;;  %v625_v30 = vpop.f32.mrf.mxu3 }
 0x16d   : > { %971 = vtanh.f32 %v651_v28  ;;  %v626_v31 = vadd.f32 %v625_v30, %v512_v29 }
 0x16f   : > { %v970_v32 = vpop.eup %969  ;;  %v667_v33 = vadd.f32 %v1458_v34, %v626_v31  ;;  %v467_v35 = vpop.f32.mrf.mxu0 }
 0x170   : > { %731 = vst.msk [vmem:[%s1465_s15 + $0xd8] sm:$0xff] %vm703_vm0, %v970_v32  ;;  %v580_v36 = vpop.f32.mrf.mxu1 }
 0x171   : > { %973 = vtanh.f32 %v667_v33  ;;  %v581_v37 = vadd.f32 %v580_v36, %v467_v35 }
 0x173   : > { %v972_v38 = vpop.eup %971  ;;  %v652_v39 = vadd.f32 %v1458_v34, %v581_v37  ;;  %v515_v40 = vpop.f32.mrf.mxu2 }
 0x174   : > { %716 = vst.msk [vmem:[%s1465_s15 + $0x60] sm:$0xff] %vm703_vm0, %v972_v38  ;;  %v628_v41 = vpop.f32.mrf.mxu3 }
 0x175   : > { %975 = vtanh.f32 %v652_v39  ;;  %v629_v42 = vadd.f32 %v628_v41, %v515_v40 }
 0x177   : > { %v974_v43 = vpop.eup %973  ;;  %v668_v44 = vadd.f32 %v1458_v34, %v629_v42  ;;  %v470_v45 = vpop.f32.mrf.mxu0 }
 0x178   : > { %732 = vst.msk [vmem:[%s1465_s15 + $0xe0] sm:$0xff] %vm703_vm0, %v974_v43  ;;  %v583_v46 = vpop.f32.mrf.mxu1 }
 0x179   : > { %977 = vtanh.f32 %v668_v44  ;;  %v584_v47 = vadd.f32 %v583_v46, %v470_v45 }
 0x17b   : > { %v976_v48 = vpop.eup %975  ;;  %v653_v49 = vadd.f32 %v1458_v34, %v584_v47  ;;  %v518_v50 = vpop.f32.mrf.mxu2 }
 0x17c   : > { %717 = vst.msk [vmem:[%s1465_s15 + $0x68] sm:$0xff] %vm703_vm0, %v976_v48  ;;  %v631_v51 = vpop.f32.mrf.mxu3 }
 0x17d   : > { %979 = vtanh.f32 %v653_v49  ;;  %v632_v52 = vadd.f32 %v631_v51, %v518_v50 }
 0x17f   : > { %v978_v53 = vpop.eup %977  ;;  %v669_v54 = vadd.f32 %v1458_v34, %v632_v52  ;;  %v473_v55 = vpop.f32.mrf.mxu0 }
 0x180   : > { %733 = vst.msk [vmem:[%s1465_s15 + $0xe8] sm:$0xff] %vm703_vm0, %v978_v53  ;;  %v586_v56 = vpop.f32.mrf.mxu1 }
 0x181   : > { %981 = vtanh.f32 %v669_v54  ;;  %v587_v57 = vadd.f32 %v586_v56, %v473_v55 }
 0x183   : > { %v980_v58 = vpop.eup %979  ;;  %v654_v59 = vadd.f32 %v1458_v34, %v587_v57  ;;  %v521_v60 = vpop.f32.mrf.mxu2 }
 0x184   : > { %718 = vst.msk [vmem:[%s1465_s15 + $0x70] sm:$0xff] %vm703_vm0, %v980_v58  ;;  %v634_v61 = vpop.f32.mrf.mxu3 }
 0x185   : > { %983 = vtanh.f32 %v654_v59  ;;  %v635_v62 = vadd.f32 %v634_v61, %v521_v60 }
 0x187   : > { %v982_v63 = vpop.eup %981  ;;  %v670_v0 = vadd.f32 %v1458_v34, %v635_v62 }
 0x188   : > { %734 = vst.msk [vmem:[%s1465_s15 + $0xf0] sm:$0xff] %vm703_vm0, %v982_v63 }
 0x189   : > { %985 = vtanh.f32 %v670_v0 }
 0x18b   : > { %v984_v1 = vpop.eup %983 }
 0x18c   : > { %719 = vst.msk [vmem:[%s1465_s15 + $0x78] sm:$0xff] %vm703_vm0, %v984_v1 }
 0x18f   : > { %v986_v2 = vpop.eup %985 }
 0x190   : > { %735 = vst.msk [vmem:[%s1465_s15 + $0xf8] sm:$0xff] %vm703_vm0, %v986_v2 }
 0x191 PF: > { %p19_p4 = scmp.ge.s32.totalorder %s1164_s24, 4   ;;  %s1584_s20 = smov %s1095_s21 }
 0x192   : > { %s1585_s21 = smov %s1099_s22  ;;  %s1586_s22 = smov %s1174_s27 }
 0x193   : > { %s1587_s23 = smov %s1164_s24  ;;  %21 = sbr.rel (!%p19_p4) target bundleno = 7 (0x7), region = 93 }
 0x198   :  { %758 = vsyncpa [#allocation4], 1 }
 0x199   :  { %760 = vsyncpa [#allocation4 + $0x1], 1 }
 0x19a   :  { %761 = vsyncpa [#allocation6], 1 }
 0x19b   :  { %763 = vsyncpa [#allocation6 + $0x1], 1 }

</bundles_post_ra>
